<compile_context>
chip_gen: v7x
topology: tpu7x:2x2x1
jax: 0.10.0
libtpu: 0.0.40
codegen_flags: <defaults>
</compile_context>

<pallas_src>
import functools

import jax
import jax.numpy as jnp
from jax.experimental import pallas as pl
from jax.experimental.pallas import tpu as pltpu


def _nll_partial_kernel(pred_ref, target_ref, out_ref, *, total_b):
    # pred_ref:   (TILE_B, C) log-probs (native dtype) in VMEM
    # target_ref: (TILE_B, 1) int32 labels in VMEM
    # out_ref:    (1, 1) f32 per-tile partial sum in SMEM
    i = pl.program_id(0)

    pred = pred_ref[...].astype(jnp.float32)          # in-kernel upcast (VPU)
    tgt = target_ref[...]                             # (TILE_B, 1) int32
    tb, c = pred.shape

    # one-hot select of the target column, then lane-axis reduce
    cls_idx = jax.lax.broadcasted_iota(jnp.int32, (tb, c), 1)
    one_hot = cls_idx == tgt                           # (TILE_B, C)
    picked = jnp.where(one_hot, pred, jnp.zeros_like(pred))
    per_row = jnp.sum(picked, axis=1, keepdims=True)   # (TILE_B, 1)

    # mask rows past the true batch size (partial last tile) on the narrow
    # (TILE_B, 1) column; select (not multiply) so garbage cannot propagate
    row_idx = jax.lax.broadcasted_iota(jnp.int32, (tb, 1), 0) + i * tb
    per_row = jnp.where(row_idx < total_b, per_row, jnp.zeros_like(per_row))

    # single cross-sublane reduce per tile -> this tile's partial sum
    out_ref[0, 0] = jnp.sum(per_row)


def _vmem_capacity_bytes():
    try:
        cap = pltpu.get_tpu_info().vmem_capacity_bytes
        if cap and int(cap) > 0:
            return int(cap)
    except Exception:
        pass
    return 64 * 1024 * 1024   # conservative: v7x per-TensorCore VMEM


def _plan(b, c, itemsize):
    """Pick tile_b from the *padded* VMEM footprint and a matching vmem limit."""
    cap = _vmem_capacity_bytes()
    # leave headroom for Mosaic internal scratch / output buffers
    footprint_budget = min((cap * 3) // 4, 96 * 1024 * 1024)
    c_pad = ((c + 127) // 128) * 128              # lane padding of pred block
    row_bytes = c_pad * itemsize + 128 * 4        # + lane-padded int32 target row
    per_buffer = footprint_budget // 2            # inputs are double-buffered
    tile = max(8, per_buffer // row_bytes)
    # for large batches keep >= 2 grid steps so the "parallel" axis can be
    # split across both TensorCores on v7x (harmless ~0.35us on 1-TC parts)
    if b >= 4096:
        half = (-(-b // 2) + 7) // 8 * 8
        tile = min(tile, half)
    if tile >= b:
        tile = b                                   # single full-extent block
    else:
        tile = max(8, (tile // 8) * 8)             # sublane-aligned tile rows
    vmem_limit = min(cap, 2 * tile * row_bytes + (8 << 20))
    vmem_limit = max(int(vmem_limit), 16 << 20)
    return int(tile), vmem_limit


def nll_loss_pallas(pred, target, trans_feat=None, *, tile_b_override=None):
    """Equivalent of get_loss.forward(pred, target, trans_feat).

    pred: (B, C) log-probabilities; target: (B,) int class ids.
    trans_feat is accepted for signature parity but unused (as in the module).
    """
    del trans_feat
    b, c = pred.shape
    target2d = target.astype(jnp.int32).reshape(b, 1)

    tile_b, vmem_limit = _plan(b, c, pred.dtype.itemsize)
    if tile_b_override is not None:
        tile_b = min(int(tile_b_override), b)
    num_tiles = pl.cdiv(b, tile_b)

    cost = pl.CostEstimate(
        flops=4 * b * c,
        transcendentals=0,
        bytes_accessed=b * c * pred.dtype.itemsize + b * 4 + num_tiles * 4,
    )

    partials = pl.pallas_call(
        functools.partial(_nll_partial_kernel, total_b=b),
        out_shape=jax.ShapeDtypeStruct((num_tiles, 1), jnp.float32),
        grid_spec=pltpu.PrefetchScalarGridSpec(
            num_scalar_prefetch=0,
            grid=(num_tiles,),
            in_specs=[
                pl.BlockSpec((tile_b, c), lambda i: (i, 0)),
                pl.BlockSpec((tile_b, 1), lambda i: (i, 0)),
            ],
            out_specs=pl.BlockSpec(
                (1, 1), lambda i: (i, 0),
                memory_space=pltpu.MemorySpace.SMEM),
        ),
        compiler_params=pltpu.CompilerParams(
            dimension_semantics=("parallel",),    # independent per-tile partials
            vmem_limit_bytes=vmem_limit,
        ),
        cost_estimate=cost,
    )(pred, target2d)

    # mean NLL: negate and scale once, outside the kernel (trivial work)
    return -jnp.sum(partials) / jnp.float32(b)


if __name__ == "__main__":
    key = jax.random.PRNGKey(0)
    k1, k2, k3, k4, k5 = jax.random.split(key, 5)

    # Case 1: small shapes consistent with the module (single block, f32)
    B, C, D, N = 8, 16, 4, 8
    logits = jax.random.normal(k1, (B, C), dtype=jnp.float32)
    pred = jax.nn.log_softmax(logits, axis=-1)           # log-probs (model head)
    target = jax.random.randint(k2, (B,), 0, C, dtype=jnp.int32)
    trans_feat = jax.random.normal(k3, (B, D, N), dtype=jnp.float32)  # unused

    loss = nll_loss_pallas(pred, target, trans_feat)
    jax.block_until_ready(loss)
    ref = -jnp.mean(pred[jnp.arange(B), target])
    assert jnp.allclose(loss, ref, atol=1e-5), (loss, ref)

    # Case 2: exercise the multi-tile "parallel" grid, partial-tile mask,
    # and bf16 in-kernel upcast (tile override forces 3 grid steps).
    B2, C2 = 20, 16
    logits2 = jax.random.normal(k4, (B2, C2), dtype=jnp.float32)
    pred2 = jax.nn.log_softmax(logits2, axis=-1).astype(jnp.bfloat16)
    target2 = jax.random.randint(k5, (B2,), 0, C2, dtype=jnp.int32)

    loss2 = nll_loss_pallas(pred2, target2, None, tile_b_override=8)
    jax.block_until_ready(loss2)
    ref2 = -jnp.mean(pred2.astype(jnp.float32)[jnp.arange(B2), target2])
    assert jnp.allclose(loss2, ref2, atol=1e-2), (loss2, ref2)

    print("KERNEL_OK")
</pallas_src>

<mosaic_0001>
module attributes {stable_mosaic.version = 11 : i64} {
  func.func @_nll_partial_kernel(%arg0: i32, %arg1: memref<8x16xf32, #tpu.memory_space<vmem>>, %arg2: memref<8x1xi32, #tpu.memory_space<vmem>>, %arg3: memref<1x1xf32, #tpu.memory_space<smem>>) attributes {dimension_semantics = [#tpu.dimension_semantics<parallel>], iteration_bounds = array<i64: 1>, scalar_prefetch = 0 : i64, scratch_operands = 0 : i64, tpu.core_type = #tpu.core_type<tc>, window_params = [{transform_indices = @transform_0, window_bounds = array<i64: 8, 16>}, {transform_indices = @transform_1, window_bounds = array<i64: 8, 1>}, {transform_indices = @transform_2, window_bounds = array<i64: 1, 1>}]} {
    %c0 = arith.constant 0 : index
    %c0_0 = arith.constant 0 : index
    %0 = vector.load %arg1[%c0, %c0_0] : memref<8x16xf32, #tpu.memory_space<vmem>>, vector<8x16xf32>
    %c0_1 = arith.constant 0 : index
    %c0_2 = arith.constant 0 : index
    %1 = vector.load %arg2[%c0_1, %c0_2] : memref<8x1xi32, #tpu.memory_space<vmem>>, vector<8x1xi32>
    %2 = tpu.iota {dimensions = array<i32: 1>} : vector<8x16xi32>
    %3 = vector.broadcast %1 : vector<8x1xi32> to vector<8x16xi32>
    %4 = arith.cmpi eq, %2, %3 : vector<8x16xi32>
    %cst = arith.constant 0.000000e+00 : f32
    %5 = vector.broadcast %cst : f32 to vector<8x16xf32>
    %6 = arith.select %4, %0, %5 : vector<8x16xi1>, vector<8x16xf32>
    %cst_3 = arith.constant dense<0.000000e+00> : vector<8xf32>
    %7 = vector.multi_reduction <add>, %6, %cst_3 [1] : vector<8x16xf32> to vector<8xf32>
    %8 = vector.shape_cast %7 : vector<8xf32> to vector<8x1xf32>
    %9 = tpu.iota {dimensions = array<i32: 0>} : vector<8x1xi32>
    %c8_i32 = arith.constant 8 : i32
    %10 = arith.muli %arg0, %c8_i32 : i32
    %11 = vector.broadcast %10 : i32 to vector<8x1xi32>
    %12 = arith.addi %9, %11 : vector<8x1xi32>
    %c8_i32_4 = arith.constant 8 : i32
    %13 = vector.broadcast %c8_i32_4 : i32 to vector<8x1xi32>
    %14 = arith.cmpi slt, %12, %13 : vector<8x1xi32>
    %cst_5 = arith.constant 0.000000e+00 : f32
    %15 = vector.broadcast %cst_5 : f32 to vector<8x1xf32>
    %16 = arith.select %14, %8, %15 : vector<8x1xi1>, vector<8x1xf32>
    %17 = vector.shape_cast %16 : vector<8x1xf32> to vector<1x8x1xf32>
    %cst_6 = arith.constant dense<0.000000e+00> : vector<1xf32>
    %18 = vector.multi_reduction <add>, %17, %cst_6 [1, 2] : vector<1x8x1xf32> to vector<1xf32>
    %19 = vector.shape_cast %18 : vector<1xf32> to vector<1x1x1xf32>
    %20 = vector.extract %19[0, 0, 0] : f32 from vector<1x1x1xf32>
    %c0_7 = arith.constant 0 : index
    %c0_8 = arith.constant 0 : index
    %21 = memref.load %arg3[%c0_7, %c0_8] : memref<1x1xf32, #tpu.memory_space<smem>>
    memref.store %20, %arg3[%c0_7, %c0_8] : memref<1x1xf32, #tpu.memory_space<smem>>
    return
  }
  func.func @transform_0(%arg0: i32) -> (i32, i32) {
    %c0_i32 = arith.constant 0 : i32
    %c0_i32_0 = arith.constant 0 : i32
    return %arg0, %c0_i32 : i32, i32
  }
  func.func @transform_1(%arg0: i32) -> (i32, i32) {
    %c0_i32 = arith.constant 0 : i32
    %c0_i32_0 = arith.constant 0 : i32
    return %arg0, %c0_i32 : i32, i32
  }
  func.func @transform_2(%arg0: i32) -> (i32, i32) {
    %c0_i32 = arith.constant 0 : i32
    %c0_i32_0 = arith.constant 0 : i32
    return %arg0, %c0_i32 : i32, i32
  }
}

</mosaic_0001>

<bundles_post_ra>
// kernel: tpu_custom_call.1
= control target key start
LH: loop header
LB: loop body
LE: loop exit
PB: predicated region body
PF: predicated region fallthrough
CT: control target
= control target key end

     0   :  { %s110_s0 = inlined_call_operand.vmem [shape: f32[8,16], index: 0, kind: input, shape index: {}]   ;;  %s111_s1 = inlined_call_operand.vmem [shape: s32[8,1], index: 1, kind: input, shape index: {}]   ;;  %s112_s2 = inlined_call_operand.hbm [shape: f32[1,1], index: 2, kind: output, shape index: {}]  }
   0x1   :  { %v13_v0 = vld [vmem:[%s111_s1] sm:$0xff] }
   0x2   :  { %7 = vsyncpa [#allocation3], 0  ;;  %v75_v1 = vmov 0   ;;  %v14_v2 = vlaneseq  ;;  %v12_v4 = vld [vmem:[%s110_s0] sm:$0xff]  ;;  %vm21_vm0 = vcmask 130048   ;;  %vm32_vm2 = vcmask 7168  }
   0x3   :  { %62 = vset.pattern.permute.xlu0 %v75_v1  ;;  %s63_s14 = scalar_lea.hbm %s112_s2, 16 }
   0x4   :  { %17 = vperm.xlu0 %62, %v13_v0   ;;  %v15_v3 = vand.u32 127, %v14_v2  ;;  %p64_p0 = scmp.ne.s32.totalorder %s112_s2, %s63_s14  ;;  %p67_p1 = scmp.lt.u32.totalorder %s63_s14, %s112_s2 }
   0x6   :  { %p69_p2 = pnand %p67_p1, %p64_p0 }
  0x83   :  { %v18_v5 = vpop.permute.xlu0 %17 }
  0x84   :  { %vm19_vm1 = vcmp.eq.s32.totalorder %v15_v3, %v18_v5 }
  0x85   :  { %v20_v6 = vsel %vm19_vm1, %v12_v4, 0.0 }
  0x86   :  { %v22_v7 = vsel %vm21_vm0, %v20_v6, 0.0 }
  0x87   :  { %23 = vadd.xlane.f32.xlu0 %v22_v7 }
 0x114   :  { %v24_v8 = vpop.xlane.xlu0 %23 }
 0x115   :  { %v33_v9 = vsel %vm32_vm2, %v24_v8, 0.0 }
 0x116   :  { %34 = vadd.xlane.f32.xlu1 %v33_v9 }
 0x1a3   :  { %v35_v10 = vpop.xlane.xlu1 %34 }
 0x1a4   :  { %v36_v11 = vrot.slane %v35_v10, 4 }
 0x1a6   :  { %v37_v12 = vadd.f32 %v36_v11, %v35_v10 }
 0x1a8   :  { %v38_v13 = vrot.slane %v37_v12, 2 }
 0x1aa   :  { %v39_v14 = vadd.f32 %v38_v13, %v37_v12 }
 0x1ac   :  { %v40_v15 = vrot.slane %v39_v14, 1 }
 0x1ae   :  { %v41_v16 = vadd.f32 %v40_v15, %v39_v14 }
 0x1b0   :  { %58 = vpush %v41_v16 }
 0x1e1   :  { %s59_s1 = spop %58 }
 0x1e2   :  { %44 = sst [smem:[#allocation2]] %s59_s1 }
 0x1e3   :  { %72 = shalt.err (!%p69_p2)
}
 0x1e4   :  { %s76_s19 = smov [#allocation2]  }
 0x1e5   :  { %52 = dma.smem_to_hbm %s76_s19, 16, %s112_s2, [#allocation3]  }
 0x1e6   :  { %73 = dma.done.wait [#allocation3], 16  }
 0x1e7   :  { %74 = vsyncadd [#allocation3], 4294967280 }
 0x1e8   :  { %56 = sfence }
 0x1e9   :  { %57 = vsyncpa [#allocation3], 1 }

</bundles_post_ra>
